<compile_context>
chip_gen: v6e
topology: v6e:2x2x1
jax: 0.10.0
libtpu: 0.0.40
codegen_flags: <defaults>
</compile_context>

<pallas_src>
import jax
import jax.numpy as jnp
from jax.experimental import pallas as pl
from jax.experimental.pallas import tpu as pltpu

HIDDEN = 64


def _qnet_kernel(x_ref, w1_ref, b1_ref, w2_ref, b2_ref, w3_ref, b3_ref, o_ref):
    """Fused 3-layer MLP on one (state_dim, tb) batch slab (batch on lanes)."""
    cdt = w1_ref.dtype  # MXU operand dtype (bf16 fast path, or f32)

    x = x_ref[...]  # (state_dim, tb), already compute dtype

    # Layer 1: (HIDDEN, state_dim) @ (state_dim, tb) -> (HIDDEN, tb), f32 accumulate.
    h1 = jnp.dot(w1_ref[...], x, preferred_element_type=jnp.float32) + b1_ref[...]
    h1 = jnp.maximum(h1, 0.0).astype(cdt)

    # Layer 2: (HIDDEN, HIDDEN) @ (HIDDEN, tb) -> (HIDDEN, tb).
    h2 = jnp.dot(w2_ref[...], h1, preferred_element_type=jnp.float32) + b2_ref[...]
    h2 = jnp.maximum(h2, 0.0).astype(cdt)

    # Layer 3: (action_dim, HIDDEN) @ (HIDDEN, tb) -> (action_dim, tb).
    out = jnp.dot(w3_ref[...], h2, preferred_element_type=jnp.float32) + b3_ref[...]
    o_ref[...] = out.astype(o_ref.dtype)


def _default_batch_tile(B):
    # Prefer lane-dense (multiple-of-128) slabs with >= 2 grid steps so the DMA
    # pipeline overlaps compute and v7x can shard across its 2 TensorCores.
    # Tiles stay tiny in VMEM (<= a few hundred KiB), safe on v5e/v6e/v7x budgets.
    for cand in (4096, 2048, 1024, 512, 256, 128):
        if B % cand == 0 and B // cand >= 2:
            return cand
    return B  # small / irregular batch: single block


def qnetwork_forward(x, params, *, batch_tile=None, compute_dtype=jnp.bfloat16):
    """Fused QNetwork forward pass.

    x:      (B, state_dim) float32 (PyTorch layout)
    params: w1 (64, state_dim), b1 (64, 1), w2 (64, 64), b2 (64, 1),
            w3 (action_dim, 64), b3 (action_dim, 1)  -- PyTorch (out, in) layout.
    Returns (B, action_dim) float32.
    """
    B, state_dim = x.shape
    action_dim = params["w3"].shape[0]

    tb = batch_tile or _default_batch_tile(B)
    assert B % tb == 0, "batch must be divisible by batch tile"
    grid = (B // tb,)

    # Lane-dense layout: batch on lanes; streamed operand in compute dtype (bf16 default).
    x_t = x.T.astype(compute_dtype)                 # (state_dim, B)
    w1 = params["w1"].astype(compute_dtype)
    w2 = params["w2"].astype(compute_dtype)
    w3 = params["w3"].astype(compute_dtype)
    b1 = params["b1"].astype(jnp.float32)
    b2 = params["b2"].astype(jnp.float32)
    b3 = params["b3"].astype(jnp.float32)

    # Tiny, grid-invariant operands: whole-array resident in VMEM (no per-step DMA,
    # no double-buffering) — only x and the output stream through the pipeline.
    resident = pl.BlockSpec(memory_space=pltpu.MemorySpace.VMEM)

    itemsize = jnp.dtype(compute_dtype).itemsize
    cost = pl.CostEstimate(
        flops=2 * B * (state_dim * HIDDEN + HIDDEN * HIDDEN + HIDDEN * action_dim),
        transcendentals=0,
        bytes_accessed=(B * state_dim * itemsize                              # x
                        + B * action_dim * 4                                  # output (f32)
                        + (state_dim + HIDDEN + action_dim) * HIDDEN * itemsize  # weights
                        + (2 * HIDDEN + action_dim) * 4),                     # biases
    )

    out_t = pl.pallas_call(
        _qnet_kernel,
        out_shape=jax.ShapeDtypeStruct((action_dim, B), jnp.float32),
        grid_spec=pltpu.PrefetchScalarGridSpec(
            num_scalar_prefetch=0,
            grid=grid,
            in_specs=[
                pl.BlockSpec((state_dim, tb), lambda i: (0, i)),   # x batch slab
                resident, resident,                                # w1, b1
                resident, resident,                                # w2, b2
                resident, resident,                                # w3, b3
            ],
            out_specs=pl.BlockSpec((action_dim, tb), lambda i: (0, i)),
        ),
        compiler_params=pltpu.CompilerParams(
            dimension_semantics=("parallel",),
        ),
        cost_estimate=cost,
    )(x_t, w1, b1, w2, b2, w3, b3)

    return out_t.T  # (B, action_dim) float32


def init_params(key, state_dim, action_dim):
    """PyTorch-Linear-like uniform fan-in init; weights in (out, in) layout."""
    ks = jax.random.split(key, 6)

    def lin(kw, kb, fan_in, fan_out):
        bound = 1.0 / jnp.sqrt(fan_in)
        w = jax.random.uniform(kw, (fan_out, fan_in), jnp.float32, -bound, bound)
        b = jax.random.uniform(kb, (fan_out, 1), jnp.float32, -bound, bound)
        return w, b

    w1, b1 = lin(ks[0], ks[1], state_dim, HIDDEN)
    w2, b2 = lin(ks[2], ks[3], HIDDEN, HIDDEN)
    w3, b3 = lin(ks[4], ks[5], HIDDEN, action_dim)
    return {"w1": w1, "b1": b1, "w2": w2, "b2": b2, "w3": w3, "b3": b3}


def _reference_forward(x, p, compute_dtype=jnp.float32):
    """Pure-JAX reference, mirroring the kernel's operand dtypes / f32 accumulation."""
    cdt = compute_dtype
    xt = x.T.astype(cdt)
    h1 = jnp.maximum(
        jnp.dot(p["w1"].astype(cdt), xt, preferred_element_type=jnp.float32) + p["b1"], 0.0
    ).astype(cdt)
    h2 = jnp.maximum(
        jnp.dot(p["w2"].astype(cdt), h1, preferred_element_type=jnp.float32) + p["b2"], 0.0
    ).astype(cdt)
    out = jnp.dot(p["w3"].astype(cdt), h2, preferred_element_type=jnp.float32) + p["b3"]
    return out.T


if __name__ == "__main__":
    key = jax.random.PRNGKey(0)
    k_param, k_x = jax.random.split(key)

    batch, state_dim, action_dim = 8, 16, 8
    params = init_params(k_param, state_dim, action_dim)
    x = jax.random.normal(k_x, (batch, state_dim), jnp.float32)

    # Exact-semantics check (f32 end-to-end, matches the PyTorch module math).
    out_f32 = jax.block_until_ready(qnetwork_forward(x, params, compute_dtype=jnp.float32))
    ref_f32 = _reference_forward(x, params, compute_dtype=jnp.float32)
    assert out_f32.shape == (batch, action_dim)
    assert jnp.allclose(out_f32, ref_f32, atol=1e-4, rtol=1e-4), "f32 mismatch vs reference"

    # Default fast path: bf16 streamed/MXU operands, f32 accumulation + epilogue.
    out_bf16 = jax.block_until_ready(qnetwork_forward(x, params))
    ref_bf16 = _reference_forward(x, params, compute_dtype=jnp.bfloat16)
    assert out_bf16.shape == (batch, action_dim)
    assert jnp.allclose(out_bf16, ref_bf16, atol=1e-2, rtol=1e-2), "bf16 mismatch vs reference"
    assert jnp.allclose(out_bf16, ref_f32, atol=1e-1, rtol=1e-1), "bf16 drifted too far from f32"

    print("KERNEL_OK")
</pallas_src>

<mosaic_0001>
module attributes {stable_mosaic.version = 11 : i64} {
  func.func @_qnet_kernel(%arg0: i32, %arg1: memref<16x8xf32, #tpu.memory_space<vmem>>, %arg2: memref<64x16xf32, #tpu.memory_space<vmem>>, %arg3: memref<64x1xf32, #tpu.memory_space<vmem>>, %arg4: memref<64x64xf32, #tpu.memory_space<vmem>>, %arg5: memref<64x1xf32, #tpu.memory_space<vmem>>, %arg6: memref<8x64xf32, #tpu.memory_space<vmem>>, %arg7: memref<8x1xf32, #tpu.memory_space<vmem>>, %arg8: memref<8x8xf32, #tpu.memory_space<vmem>>) attributes {dimension_semantics = [#tpu.dimension_semantics<parallel>], iteration_bounds = array<i64: 1>, scalar_prefetch = 0 : i64, scratch_operands = 0 : i64, tpu.core_type = #tpu.core_type<tc>, window_params = [{transform_indices = @transform_0, window_bounds = array<i64: 16, 8>}, {pipeline_mode = #tpu.pipeline_mode<synchronous>, transform_indices = @transform_1, window_bounds = array<i64: 64, 16>}, {pipeline_mode = #tpu.pipeline_mode<synchronous>, transform_indices = @transform_2, window_bounds = array<i64: 64, 1>}, {pipeline_mode = #tpu.pipeline_mode<synchronous>, transform_indices = @transform_3, window_bounds = array<i64: 64, 64>}, {pipeline_mode = #tpu.pipeline_mode<synchronous>, transform_indices = @transform_4, window_bounds = array<i64: 64, 1>}, {pipeline_mode = #tpu.pipeline_mode<synchronous>, transform_indices = @transform_5, window_bounds = array<i64: 8, 64>}, {pipeline_mode = #tpu.pipeline_mode<synchronous>, transform_indices = @transform_6, window_bounds = array<i64: 8, 1>}, {transform_indices = @transform_7, window_bounds = array<i64: 8, 8>}]} {
    %c0 = arith.constant 0 : index
    %c0_0 = arith.constant 0 : index
    %0 = vector.load %arg1[%c0, %c0_0] : memref<16x8xf32, #tpu.memory_space<vmem>>, vector<16x8xf32>
    %c0_1 = arith.constant 0 : index
    %c0_2 = arith.constant 0 : index
    %1 = vector.load %arg2[%c0_1, %c0_2] : memref<64x16xf32, #tpu.memory_space<vmem>>, vector<64x16xf32>
    %cst = arith.constant dense<0.000000e+00> : vector<64x8xf32>
    %2 = tpu.matmul %1, %0, %cst {dimension_numbers = #tpu.dot_dimension_numbers<[1], [0], [0], [1], [0, 0, 1, 1], [], []>} : vector<64x16xf32>, vector<16x8xf32>, vector<64x8xf32> -> vector<64x8xf32>
    %c0_3 = arith.constant 0 : index
    %c0_4 = arith.constant 0 : index
    %3 = vector.load %arg3[%c0_3, %c0_4] : memref<64x1xf32, #tpu.memory_space<vmem>>, vector<64x1xf32>
    %4 = vector.broadcast %3 : vector<64x1xf32> to vector<64x8xf32>
    %5 = arith.addf %2, %4 : vector<64x8xf32>
    %cst_5 = arith.constant 0.000000e+00 : f32
    %6 = vector.broadcast %cst_5 : f32 to vector<64x8xf32>
    %7 = arith.maximumf %5, %6 : vector<64x8xf32>
    %c0_6 = arith.constant 0 : index
    %c0_7 = arith.constant 0 : index
    %8 = vector.load %arg4[%c0_6, %c0_7] : memref<64x64xf32, #tpu.memory_space<vmem>>, vector<64x64xf32>
    %cst_8 = arith.constant dense<0.000000e+00> : vector<64x8xf32>
    %9 = tpu.matmul %8, %7, %cst_8 {dimension_numbers = #tpu.dot_dimension_numbers<[1], [0], [0], [1], [0, 0, 1, 1], [], []>} : vector<64x64xf32>, vector<64x8xf32>, vector<64x8xf32> -> vector<64x8xf32>
    %c0_9 = arith.constant 0 : index
    %c0_10 = arith.constant 0 : index
    %10 = vector.load %arg5[%c0_9, %c0_10] : memref<64x1xf32, #tpu.memory_space<vmem>>, vector<64x1xf32>
    %11 = vector.broadcast %10 : vector<64x1xf32> to vector<64x8xf32>
    %12 = arith.addf %9, %11 : vector<64x8xf32>
    %cst_11 = arith.constant 0.000000e+00 : f32
    %13 = vector.broadcast %cst_11 : f32 to vector<64x8xf32>
    %14 = arith.maximumf %12, %13 : vector<64x8xf32>
    %c0_12 = arith.constant 0 : index
    %c0_13 = arith.constant 0 : index
    %15 = vector.load %arg6[%c0_12, %c0_13] : memref<8x64xf32, #tpu.memory_space<vmem>>, vector<8x64xf32>
    %cst_14 = arith.constant dense<0.000000e+00> : vector<8x8xf32>
    %16 = tpu.matmul %15, %14, %cst_14 {dimension_numbers = #tpu.dot_dimension_numbers<[1], [0], [0], [1], [0, 0, 1, 1], [], []>} : vector<8x64xf32>, vector<64x8xf32>, vector<8x8xf32> -> vector<8x8xf32>
    %c0_15 = arith.constant 0 : index
    %c0_16 = arith.constant 0 : index
    %17 = vector.load %arg7[%c0_15, %c0_16] : memref<8x1xf32, #tpu.memory_space<vmem>>, vector<8x1xf32>
    %18 = vector.broadcast %17 : vector<8x1xf32> to vector<8x8xf32>
    %19 = arith.addf %16, %18 : vector<8x8xf32>
    %c0_17 = arith.constant 0 : index
    %c0_18 = arith.constant 0 : index
    %20 = vector.load %arg8[%c0_17, %c0_18] : memref<8x8xf32, #tpu.memory_space<vmem>>, vector<8x8xf32>
    tpu.vector_store %arg8[%c0_17, %c0_18], %19 {strides = array<i32>} : memref<8x8xf32, #tpu.memory_space<vmem>>, vector<8x8xf32>,
    return
  }
  func.func @transform_0(%arg0: i32) -> (i32, i32) {
    %c0_i32 = arith.constant 0 : i32
    %c0_i32_0 = arith.constant 0 : i32
    return %c0_i32, %arg0 : i32, i32
  }
  func.func @transform_1(%arg0: i32) -> (i32, i32) {
    %c0_i32 = arith.constant 0 : i32
    %c0_i32_0 = arith.constant 0 : i32
    %c0_i32_1 = arith.constant 0 : i32
    return %c0_i32, %c0_i32_0 : i32, i32
  }
  func.func @transform_2(%arg0: i32) -> (i32, i32) {
    %c0_i32 = arith.constant 0 : i32
    %c0_i32_0 = arith.constant 0 : i32
    %c0_i32_1 = arith.constant 0 : i32
    return %c0_i32, %c0_i32_0 : i32, i32
  }
  func.func @transform_3(%arg0: i32) -> (i32, i32) {
    %c0_i32 = arith.constant 0 : i32
    %c0_i32_0 = arith.constant 0 : i32
    %c0_i32_1 = arith.constant 0 : i32
    return %c0_i32, %c0_i32_0 : i32, i32
  }
  func.func @transform_4(%arg0: i32) -> (i32, i32) {
    %c0_i32 = arith.constant 0 : i32
    %c0_i32_0 = arith.constant 0 : i32
    %c0_i32_1 = arith.constant 0 : i32
    return %c0_i32, %c0_i32_0 : i32, i32
  }
  func.func @transform_5(%arg0: i32) -> (i32, i32) {
    %c0_i32 = arith.constant 0 : i32
    %c0_i32_0 = arith.constant 0 : i32
    %c0_i32_1 = arith.constant 0 : i32
    return %c0_i32, %c0_i32_0 : i32, i32
  }
  func.func @transform_6(%arg0: i32) -> (i32, i32) {
    %c0_i32 = arith.constant 0 : i32
    %c0_i32_0 = arith.constant 0 : i32
    %c0_i32_1 = arith.constant 0 : i32
    return %c0_i32, %c0_i32_0 : i32, i32
  }
  func.func @transform_7(%arg0: i32) -> (i32, i32) {
    %c0_i32 = arith.constant 0 : i32
    %c0_i32_0 = arith.constant 0 : i32
    return %c0_i32, %arg0 : i32, i32
  }
}

</mosaic_0001>

<bundles_post_ra>
// kernel: tpu_custom_call.1
= control target key start
LH: loop header
LB: loop body
LE: loop exit
PB: predicated region body
PF: predicated region fallthrough
CT: control target
= control target key end

     0   :  { %vm85_vm0 = vcmask 130048   ;;  %v656_v4 = vmov 0   ;;  %s828_s0 = inlined_call_operand.vmem [shape: f32[16,8], index: 0, kind: input, shape index: {}]   ;;  %s829_s1 = inlined_call_operand.vmem [shape: f32[64,16], index: 1, kind: input, shape index: {}]   ;;  %s830_s2 = inlined_call_operand.vmem [shape: f32[64,1], index: 2, kind: input, shape index: {}]   ;;  %s831_s3 = inlined_call_operand.vmem [shape: f32[64,64], index: 3, kind: input, shape index: {}]   ;;  %s832_s4 = inlined_call_operand.vmem [shape: f32[64,1], index: 4, kind: input, shape index: {}]   ;;  %s833_s5 = inlined_call_operand.vmem [shape: f32[8,64], index: 5, kind: input, shape index: {}]   ;;  %s834_s6 = inlined_call_operand.vmem [shape: f32[8,1], index: 6, kind: input, shape index: {}]   ;;  %s835_s7 = inlined_call_operand.hbm [shape: f32[8,8], index: 7, kind: output, shape index: {}]  }
   0x1   :  { %v28_v0 = vld [vmem:[%s828_s0 + $0x8] sm:$0xff]  ;;  %v27_v1 = vld [vmem:[%s828_s0] sm:$0xff]  ;;  %632 = vset.pattern.permute.xlu0 %v656_v4  ;;  %v31_v5 = vld [vmem:[%s829_s1 + $0x10] sm:$0xff]  ;;  %633 = vset.pattern.permute.xlu1 %v656_v4 }
   0x2   :  { %v29_v2 = vld [vmem:[%s829_s1] sm:$0xff]  ;;  %565 = vmatprep.subr.mxu0 %v28_v0  ;;  %v30_v3 = vld [vmem:[%s829_s1 + $0x8] sm:$0xff]  ;;  %v44_v6 = vld [vmem:[%s830_s2 + $0x38] sm:$0xff] }
   0x3   :  { %569 = vmatprep.mubr.msk.f32.mxu0 %vm85_vm0, %v29_v2  ;;  %566 = vmatpush3.msra.mxu0 %v28_v0  ;;  %v42_v7 = vld [vmem:[%s830_s2 + $0x28] sm:$0xff]  ;;  %v43_v8 = vld [vmem:[%s830_s2 + $0x30] sm:$0xff]  ;;  %v32_v9 = vld [vmem:[%s829_s1 + $0x18] sm:$0xff] }
   0x4   :  { %567 = vmatprep.subr.mxu0 %v27_v1  ;;  %82 = vperm.xlu0 %632, %v44_v6   ;;  %v41_v10 = vld [vmem:[%s830_s2 + $0x20] sm:$0xff]  ;;  %v40_v12 = vld [vmem:[%s830_s2 + $0x18] sm:$0xff] }
   0x5   :  { %568 = vmatpush3.msra.mxu0 %v27_v1  ;;  %72 = vperm.xlu1 %633, %v42_v7   ;;  %v33_v11 = vld [vmem:[%s829_s1 + $0x20] sm:$0xff] }
   0x6   :  { %570 = vmatmul.mubr.msk.f32.vlgmr.msra.gmra.mxu0 %vm85_vm0, %v30_v3 }
   0x7   :  { %572 = vmatprep.mubr.msk.f32.mxu0 %vm85_vm0, %v31_v5 }
   0x8   :  { %77 = vperm.xlu0 %632, %v43_v8  }
   0x9   :  { %67 = vperm.xlu1 %633, %v41_v10  }
   0xa   :  { %573 = vmatmul.mubr.msk.f32.gmra.mxu0 %vm85_vm0, %v32_v9 }
   0xb   :  { %12 = vsyncpa [#allocation3], 0  ;;  %575 = vmatprep.mubr.msk.f32.mxu0 %vm85_vm0, %v33_v11  ;;  %v34_v13 = vld [vmem:[%s829_s1 + $0x28] sm:$0xff]  ;;  %v39_v14 = vld [vmem:[%s830_s2 + $0x10] sm:$0xff]  ;;  %vm279_vm1 = vcmask 523264   ;;  %v657_v4 = vmov 0.0  }
   0xc   :  { %v35_v15 = vld [vmem:[%s829_s1 + $0x30] sm:$0xff]  ;;  %62 = vperm.xlu0 %632, %v40_v12   ;;  %v38_v16 = vld [vmem:[%s830_s2 + $0x8] sm:$0xff]  ;;  %v36_v17 = vld [vmem:[%s829_s1 + $0x38] sm:$0xff]  ;;  %609 = vmatprep.subr.mxu0 %v657_v4  ;;  %vm658_vm2 = vmmov 0   ;;  %vm497_vm3 = vcmask 64512  }
   0xd   :  { %57 = vperm.xlu1 %633, %v39_v14   ;;  %v37_v18 = vld [vmem:[%s830_s2] sm:$0xff]  ;;  %v238_v19 = vld [vmem:[%s832_s4 + $0x38] sm:$0xff]  ;;  %v237_v20 = vld [vmem:[%s832_s4 + $0x30] sm:$0xff]  ;;  %s659_s2 = smov [#allocation2]  }
   0xe   :  { %576 = vmatmul.mubr.msk.f32.gmra.mxu0 %vm85_vm0, %v34_v13  ;;  %v236_v21 = vld [vmem:[%s832_s4 + $0x28] sm:$0xff]  ;;  %v235_v22 = vld [vmem:[%s832_s4 + $0x20] sm:$0xff]  ;;  %v234_v23 = vld [vmem:[%s832_s4 + $0x18] sm:$0xff]  ;;  %s505_s18 = sshll.u32 %s659_s2, 4  ;;  %s506_s18 = int_to_ptr.vmem [resolvable:$true] %s505_s18 }
   0xf   :  { %578 = vmatprep.mubr.msk.f32.mxu0 %vm85_vm0, %v35_v15  ;;  %v233_v24 = vld [vmem:[%s832_s4 + $0x10] sm:$0xff]  ;;  %v232_v25 = vld [vmem:[%s832_s4 + $0x8] sm:$0xff]  ;;  %v231_v26 = vld [vmem:[%s832_s4] sm:$0xff]  ;;  %s634_s19 = scalar_lea.vmem %s506_s18, 128  ;;  %p639_p1 = scmp.lt.s32.totalorder %s506_s18, %s506_s18 }
  0x10   :  { %52 = vperm.xlu0 %632, %v38_v16   ;;  %v418_v27 = vld [vmem:[%s834_s6] sm:$0xff]  ;;  %v224_v61 = vld [vmem:[%s831_s3 + $0x8] sm:$0xff]  ;;  %v225_v62 = vld [vmem:[%s831_s3 + $0x10] sm:$0xff]  ;;  %p635_p0 = scmp.ne.s32.totalorder %s506_s18, %s634_s19  ;;  %p640_p2 = scmp.lt.s32.totalorder %s634_s19, %s634_s19 }
  0x11   :  { %47 = vperm.xlu1 %633, %v37_v18   ;;  %v223_v28 = vld [vmem:[%s831_s3] sm:$0xff]  ;;  %v226_v63 = vld [vmem:[%s831_s3 + $0x18] sm:$0xff]  ;;  %v228_v1 = vld [vmem:[%s831_s3 + $0x28] sm:$0xff] }
  0x12   :  { %579 = vmatmul.mubr.msk.f32.gmra.mxu0 %vm85_vm0, %v36_v17  ;;  %597 = vmatprep.mubr.msk.f32.mxu1 %vm279_vm1, %v223_v28  ;;  %v227_v0 = vld [vmem:[%s831_s3 + $0x20] sm:$0xff]  ;;  %v229_v2 = vld [vmem:[%s831_s3 + $0x30] sm:$0xff]  ;;  %v230_v3 = vld [vmem:[%s831_s3 + $0x38] sm:$0xff]  ;;  %p641_p3 = por %p640_p2, %p639_p1 }
  0x13   :  { %625 = vmatprep.mubr.msk.f32.mxu0 %vm658_vm2, %v657_v4 }
  0x14   :  { %276 = vperm.xlu0 %632, %v238_v19   ;;  %p642_p4 = pnand %p641_p3, %p635_p0 }
  0x15   :  { %271 = vperm.xlu1 %633, %v237_v20  }
  0x18   :  { %266 = vperm.xlu0 %632, %v236_v21  }
  0x19   :  { %261 = vperm.xlu1 %633, %v235_v22  }
  0x1c   :  { %256 = vperm.xlu0 %632, %v234_v23  }
  0x1d   :  { %251 = vperm.xlu1 %633, %v233_v24  }
  0x20   :  { %246 = vperm.xlu0 %632, %v232_v25  }
  0x21   :  { %241 = vperm.xlu1 %633, %v231_v26  }
  0x24   :  { %421 = vperm.xlu0 %632, %v418_v27  }
  0x7f   :  { %v83_v31 = vpop.permute.xlu0 %82 }
  0x80   :  { %v73_v33 = vpop.permute.xlu1 %72 }
  0x83   :  { %v78_v36 = vpop.permute.xlu0 %77 }
  0x84   :  { %v68_v38 = vpop.permute.xlu1 %67 }
  0x87   :  { %v63_v45 = vpop.permute.xlu0 %62 }
  0x88   :  { %v58_v48 = vpop.permute.xlu1 %57 }
  0x8b   :  { %v53_v53 = vpop.permute.xlu0 %52 }
  0x8c   :  { %v48_v56 = vpop.permute.xlu1 %47 }
  0x8f   :  { %v277_v7 = vpop.permute.xlu0 %276 }
  0x90   :  { %v272_v9 = vpop.permute.xlu1 %271 }
  0x93   :  { %v267_v12 = vpop.permute.xlu0 %266 }
  0x94   :  { %v262_v14 = vpop.permute.xlu1 %261 }
  0x97   :  { %v257_v21 = vpop.permute.xlu0 %256 }
  0x98   :  { %v252_v24 = vpop.permute.xlu1 %251 }
  0xc6   :  { %v571_v29 = vpop.f32.mrf.mxu0 }
  0xc7   :  { %v182_v54 = vadd.f32 %v571_v29, %v53_v53  ;;  %v247_v29 = vpop.permute.xlu0 %246 }
  0xc8   :  { %v176_v30 = vpop.f32.mrf.mxu0 }
  0xc9   :  { %v177_v57 = vadd.f32 %v176_v30, %v48_v56  ;;  %v216_v59 = vmax.f32 %v182_v54, 0.0 }
  0xca   :  { %v574_v32 = vpop.f32.mrf.mxu0 }
  0xcb   :  { %v192_v49 = vadd.f32 %v574_v32, %v63_v45  ;;  %v215_v60 = vmax.f32 %v177_v57, 0.0  ;;  %v242_v32 = vpop.permute.xlu1 %241 }
  0xcc   :  { %v186_v34 = vpop.f32.mrf.mxu0 }
  0xcd   :  { %v187_v51 = vadd.f32 %v186_v34, %v58_v48  ;;  %v218_v55 = vmax.f32 %v192_v49, 0.0 }
  0xce   :  { %v577_v35 = vpop.f32.mrf.mxu0 }
  0xcf   :  { %v202_v42 = vadd.f32 %v577_v35, %v73_v33  ;;  %v217_v58 = vmax.f32 %v187_v51, 0.0 }
  0xd0   :  { %v196_v37 = vpop.f32.mrf.mxu0 }
  0xd1   :  { %v197_v46 = vadd.f32 %v196_v37, %v68_v38  ;;  %v220_v50 = vmax.f32 %v202_v42, 0.0  ;;  %v417_v37 = vld [vmem:[%s833_s5] sm:$0xff]  ;;  %v422_v38 = vpop.permute.xlu0 %421 }
  0xd2   :  { %v580_v39 = vpop.f32.mrf.mxu0 }
  0xd3   :  { %v212_v40 = vadd.f32 %v580_v39, %v83_v31  ;;  %v219_v52 = vmax.f32 %v197_v46, 0.0 }
  0xd4   :  { %v206_v41 = vpop.f32.mrf.mxu0 }
  0xd5   :  { %v222_v43 = vmax.f32 %v212_v40, 0.0  ;;  %v207_v44 = vadd.f32 %v206_v41, %v78_v36 }
  0xd7   :  { %v221_v47 = vmax.f32 %v207_v44, 0.0  ;;  %581 = vmatprep.subr.mxu1 %v222_v43 }
  0xd8   :  { %582 = vmatpush3.msra.mxu1 %v222_v43 }
  0xd9   :  { %583 = vmatprep.subr.mxu1 %v221_v47 }
  0xda   :  { %584 = vmatpush3.msra.mxu1 %v221_v47 }
  0xdb   :  { %585 = vmatprep.subr.mxu1 %v220_v50 }
  0xdc   :  { %586 = vmatpush3.msra.mxu1 %v220_v50 }
  0xdd   :  { %587 = vmatprep.subr.mxu1 %v219_v52 }
  0xde   :  { %588 = vmatpush3.msra.mxu1 %v219_v52 }
  0xdf   :  { %589 = vmatprep.subr.mxu1 %v218_v55 }
  0xe0   :  { %590 = vmatpush3.msra.mxu1 %v218_v55 }
  0xe1   :  { %591 = vmatprep.subr.mxu1 %v217_v58 }
  0xe2   :  { %592 = vmatpush3.msra.mxu1 %v217_v58 }
  0xe3   :  { %593 = vmatprep.subr.mxu1 %v216_v59 }
  0xe4   :  { %594 = vmatpush3.msra.mxu1 %v216_v59 }
  0xe5   :  { %595 = vmatprep.subr.mxu1 %v215_v60 }
  0xe6   :  { %596 = vmatpush3.msra.mxu1 %v215_v60 }
  0xe7   :  { %598 = vmatmul.mubr.msk.f32.vlgmr.msra.gmra.mxu1 %vm279_vm1, %v224_v61 }
  0xe8   :  { %600 = vmatprep.mubr.msk.f32.mxu1 %vm279_vm1, %v225_v62 }
  0xeb   :  { %601 = vmatmul.mubr.msk.f32.gmra.mxu1 %vm279_vm1, %v226_v63 }
  0xec   :  { %603 = vmatprep.mubr.msk.f32.mxu1 %vm279_vm1, %v227_v0 }
  0xef   :  { %604 = vmatmul.mubr.msk.f32.gmra.mxu1 %vm279_vm1, %v228_v1 }
  0xf0   :  { %606 = vmatprep.mubr.msk.f32.mxu1 %vm279_vm1, %v229_v2 }
  0xf3   :  { %607 = vmatmul.mubr.msk.f32.gmra.mxu1 %vm279_vm1, %v230_v3 }
 0x1a7   :  { %v599_v5 = vpop.f32.mrf.mxu1 }
 0x1a8   :  { %v376_v30 = vadd.f32 %v599_v5, %v247_v29 }
 0x1a9   :  { %v370_v6 = vpop.f32.mrf.mxu1 }
 0x1aa   :  { %v371_v33 = vadd.f32 %v370_v6, %v242_v32  ;;  %v410_v35 = vmax.f32 %v376_v30, 0.0 }
 0x1ab   :  { %v602_v8 = vpop.f32.mrf.mxu1 }
 0x1ac   :  { %v386_v25 = vadd.f32 %v602_v8, %v257_v21  ;;  %v409_v36 = vmax.f32 %v371_v33, 0.0 }
 0x1ad   :  { %v380_v10 = vpop.f32.mrf.mxu1 }
 0x1ae   :  { %v381_v27 = vadd.f32 %v380_v10, %v252_v24  ;;  %v412_v31 = vmax.f32 %v386_v25, 0.0 }
 0x1af   :  { %v605_v11 = vpop.f32.mrf.mxu1 }
 0x1b0   :  { %v396_v18 = vadd.f32 %v605_v11, %v267_v12  ;;  %v411_v34 = vmax.f32 %v381_v27, 0.0 }
 0x1b1   :  { %v390_v13 = vpop.f32.mrf.mxu1 }
 0x1b2   :  { %v391_v22 = vadd.f32 %v390_v13, %v262_v14  ;;  %v414_v26 = vmax.f32 %v396_v18, 0.0 }
 0x1b3   :  { %v608_v15 = vpop.f32.mrf.mxu1 }
 0x1b4   :  { %v406_v16 = vadd.f32 %v608_v15, %v277_v7  ;;  %v413_v28 = vmax.f32 %v391_v22, 0.0 }
 0x1b5   :  { %v400_v17 = vpop.f32.mrf.mxu1 }
 0x1b6   :  { %v416_v19 = vmax.f32 %v406_v16, 0.0  ;;  %v401_v20 = vadd.f32 %v400_v17, %v272_v9 }
 0x1b8   :  { %v415_v23 = vmax.f32 %v401_v20, 0.0  ;;  %610 = vmatpush3.msra.mxu0 %v416_v19 }
 0x1b9   :  { %611 = vmatprep.subr.mxu0 %v657_v4 }
 0x1ba   :  { %612 = vmatpush3.msra.mxu0 %v415_v23 }
 0x1bb   :  { %613 = vmatprep.subr.mxu0 %v657_v4 }
 0x1bc   :  { %614 = vmatpush3.msra.mxu0 %v414_v26 }
 0x1bd   :  { %615 = vmatprep.subr.mxu0 %v657_v4 }
 0x1be   :  { %616 = vmatpush3.msra.mxu0 %v413_v28 }
 0x1bf   :  { %617 = vmatprep.subr.mxu0 %v657_v4 }
 0x1c0   :  { %618 = vmatpush3.msra.mxu0 %v412_v31 }
 0x1c1   :  { %619 = vmatprep.subr.mxu0 %v657_v4 }
 0x1c2   :  { %620 = vmatpush3.msra.mxu0 %v411_v34 }
 0x1c3   :  { %621 = vmatprep.subr.mxu0 %v657_v4 }
 0x1c4   :  { %622 = vmatpush3.msra.mxu0 %v410_v35 }
 0x1c5   :  { %623 = vmatprep.subr.mxu0 %v657_v4 }
 0x1c6   :  { %624 = vmatpush3.msra.mxu0 %v409_v36 }
 0x1c7   :  { %626 = vmatmul.mubr.msk.f32.vlgmr.msra.gmra.mxu0 %vm279_vm1, %v417_v37 }
 0x287   :  { %v493_v39 = vpop.f32.mrf.mxu0 }
 0x288   :  { %v494_v40 = vadd.f32 %v493_v39, %v422_v38 }
 0x289   :  { %v627_v41 = vpop.f32.mrf.mxu0 }
 0x28a   :  { %498 = vst.msk [vmem:[#allocation2] sm:$0xff] %vm497_vm3, %v494_v40 }
 0x28b   :  { %645 = shalt.err (!%p642_p4)
}
 0x28c   :  { %508 = dma.vmem_to_hbm [thread:$0]  %s506_s18, 128, %s835_s7, [#allocation3]  }
 0x28d   :  { %654 = dma.done.wait [#allocation3], 128  }
 0x28e   :  { %655 = vsyncadd [#allocation3], 4294967168 }
 0x28f   :  { %512 = vsyncpa [#allocation3], 1 }

</bundles_post_ra>
